<compile_context>
chip_gen: v7x
topology: tpu7x:2x2x1
jax: 0.10.0
libtpu: 0.0.40
codegen_flags: <defaults>
</compile_context>

<pallas_src>
from functools import partial

import jax
import jax.numpy as jnp
from jax.experimental import pallas as pl
from jax.experimental.pallas import tpu as pltpu


# -----------------------------------------------------------------------------
# Pallas kernel: in-kernel fused-embedding lookup + unrolled recurrence + FC
# -----------------------------------------------------------------------------
def rnn_fwd_kernel(ids_ref,      # (Bb, T)   int32 token ids (batch-major)
                   seqlen_ref,   # (Bb, 1)   int32 valid lengths (0 for pad rows)
                   tab_ref,      # (Vp, H)   fused table: emb @ W_ih^T + (b_ih+b_hh)
                   whh_t_ref,    # (H, H)    W_hh^T
                   wfc_t_ref,    # (H, Lp)   W_fc^T   (lane-padded to 128)
                   bfc_ref,      # (1, Lp)   fc bias  (lane-padded to 128)
                   logits_ref):  # (Bb, Lp)  output (lane-dense store)
    Bb, T = ids_ref.shape
    Vp, H = tab_ref.shape

    ids = ids_ref[...]                                   # (Bb, T) int32
    tab = tab_ref[...]                                   # (Vp, H)
    whh_t = whh_t_ref[...]                               # (H, H)
    v_iota = jax.lax.broadcasted_iota(jnp.int32, (Bb, Vp), 1)

    # Fused embedding + input projection + bias, hoisted off the sequential
    # path: one-hot(ids[:, t]) @ fused_table.  Each lookup is a tiny MXU
    # matmul that is independent of h, so the scheduler overlaps all of them
    # with the recurrence matmuls below.
    xw = []
    for t in range(T):
        onehot_t = (ids[:, t:t + 1] == v_iota).astype(jnp.float32)   # (Bb, Vp)
        xw.append(jnp.dot(onehot_t, tab,
                          preferred_element_type=jnp.float32))       # (Bb, H)

    # Broadcast seq_len across lanes once (hoisted; JAX does not CSE broadcasts).
    sl_b = jnp.broadcast_to(seqlen_ref[...], (Bb, H))    # (Bb, H) int32

    # Fully unrolled recurrence (T is small & static); h lives in vregs.
    # pack_padded_sequence semantics: h is frozen once t >= seq_len[b].
    # The per-step where/compare is VPU filler hidden under MXU latency.
    h = jnp.zeros((Bb, H), jnp.float32)
    for t in range(T):
        h_new = jnp.tanh(
            xw[t] + jnp.dot(h, whh_t, preferred_element_type=jnp.float32))
        h = jnp.where(sl_b > t, h_new, h)

    # Final linear head on the last valid hidden state (lane-dense store).
    logits_ref[...] = (jnp.dot(h, wfc_t_ref[...],
                               preferred_element_type=jnp.float32)
                       + bfc_ref[...])


# -----------------------------------------------------------------------------
# Wrapper: batch padding + batch-parallel grid + single pallas_call
# -----------------------------------------------------------------------------
@partial(jax.jit, static_argnames=("num_labels", "block_b"))
def nlp_rnn_forward(input_ids, seq_len, params, num_labels, block_b=256):
    """input_ids: (B, T) int, seq_len: (B,) int  ->  logits (B, num_labels)."""
    tab = params["fused_table"]         # (Vp, H)
    whh_t = params["whh_t"]             # (H, H)
    wfc_t = params["wfc_t"]             # (H, Lp)
    bfc = params["bfc"]                 # (1, Lp)

    ids = input_ids.astype(jnp.int32)
    B, T = ids.shape
    Vp, H = tab.shape
    Lp = wfc_t.shape[1]

    # Batch block: multiple of 8 sublanes, capped at block_b.  The grid over
    # batch blocks is marked "parallel" so v7x shards blocks across its two
    # TensorCores; at grid=(1,) (small B) it adds no overhead.
    Bb = min(block_b, ((B + 7) // 8) * 8)
    Bb = ((Bb + 7) // 8) * 8
    Bp = ((B + Bb - 1) // Bb) * Bb
    pad_rows = Bp - B

    # Padded batch rows get seq_len = 0, so their hidden state never updates
    # and stays zero regardless of what token id / embedding row the padding
    # selects (correctness does NOT rely on pad_token_id == 0 here).
    ids_p = jnp.pad(ids, ((0, pad_rows), (0, 0)))
    seq_p = jnp.pad(seq_len.astype(jnp.int32), (0, pad_rows)).reshape(Bp, 1)

    grid = (Bp // Bb,)
    logits_p = pl.pallas_call(
        rnn_fwd_kernel,
        out_shape=jax.ShapeDtypeStruct((Bp, Lp), jnp.float32),
        grid_spec=pltpu.PrefetchScalarGridSpec(
            num_scalar_prefetch=0,
            grid=grid,
            in_specs=[
                pl.BlockSpec((Bb, T), lambda i: (i, 0)),    # ids block
                pl.BlockSpec((Bb, 1), lambda i: (i, 0)),    # seq_len block
                pl.BlockSpec((Vp, H), lambda i: (0, 0)),    # fused table (resident)
                pl.BlockSpec((H, H), lambda i: (0, 0)),     # W_hh^T     (resident)
                pl.BlockSpec((H, Lp), lambda i: (0, 0)),    # W_fc^T     (resident)
                pl.BlockSpec((1, Lp), lambda i: (0, 0)),    # fc bias    (resident)
            ],
            out_specs=pl.BlockSpec((Bb, Lp), lambda i: (i, 0)),
        ),
        compiler_params=pltpu.CompilerParams(
            dimension_semantics=("parallel",)),
    )(ids_p, seq_p, tab, whh_t, wfc_t, bfc)

    return logits_p[:B, :num_labels]


# -----------------------------------------------------------------------------
# Deterministic parameter init (mirrors nn.Embedding / nn.RNN / nn.Linear)
# -----------------------------------------------------------------------------
def init_params(key, vocab_size, embed_dim, hidden_size, num_labels, pad_token_id):
    k_emb, k_wih, k_whh, k_bih, k_bhh, k_wfc, k_bfc = jax.random.split(key, 7)

    # nn.Embedding(..., padding_idx=pad, max_norm=0.5): N(0,1) init, pad row = 0,
    # rows renormed to max L2 norm 0.5.  Applied eagerly to the whole table;
    # PyTorch renorms lazily per lookup — identical for this eval-mode forward,
    # would diverge only under training / table reuse.
    emb = jax.random.normal(k_emb, (vocab_size, embed_dim), dtype=jnp.float32)
    emb = emb.at[pad_token_id].set(0.0)
    norms = jnp.linalg.norm(emb, axis=1, keepdims=True)
    scale = jnp.where(norms > 0.5, 0.5 / jnp.maximum(norms, 1e-12), 1.0)
    emb = emb * scale

    k = 1.0 / jnp.sqrt(hidden_size)

    def unif(key, shape):
        return jax.random.uniform(key, shape, jnp.float32, -k, k)

    wih = unif(k_wih, (hidden_size, embed_dim))     # PyTorch weight_ih_l0 (H, E)
    whh = unif(k_whh, (hidden_size, hidden_size))   # weight_hh_l0 (H, H)
    bih = unif(k_bih, (hidden_size,))
    bhh = unif(k_bhh, (hidden_size,))
    wfc = unif(k_wfc, (num_labels, hidden_size))    # fc.weight (L, H)
    bfc = unif(k_bfc, (num_labels,))

    bias = (bih + bhh)[None, :]                     # (1, H) pre-summed RNN bias

    # Constant fused table: embedding + input projection + bias folded together.
    fused = emb @ wih.T + bias                      # (V, H)

    # Pad vocab to a multiple of 128 lanes for the in-kernel one-hot lookup;
    # padded rows are never selected (ids < V), zeros are fine.
    Vp = ((vocab_size + 127) // 128) * 128
    fused_p = jnp.zeros((Vp, hidden_size), jnp.float32).at[:vocab_size].set(fused)

    # Pad label dim to a multiple of 128 lanes so the logits store is unmasked;
    # padded columns produce 0 and are sliced off in the wrapper.
    Lp = ((num_labels + 127) // 128) * 128
    wfc_t_p = jnp.zeros((hidden_size, Lp), jnp.float32).at[:, :num_labels].set(wfc.T)
    bfc_p = jnp.zeros((1, Lp), jnp.float32).at[:, :num_labels].set(bfc)

    return {
        # kernel params
        "fused_table": fused_p,             # (Vp, H)
        "whh_t": whh.T,                     # (H, H)
        "wfc_t": wfc_t_p,                   # (H, Lp)
        "bfc": bfc_p,                       # (1, Lp)
        # raw pieces kept only for the pure-JAX reference check
        "embedding": emb,
        "wih_t": wih.T,
        "bias": bias,
    }


def reference_forward(input_ids, seq_len, params, num_labels):
    """Pure-JAX reference of the same forward pass (pack_padded + RNN + fc)."""
    x = params["embedding"][input_ids].astype(jnp.float32)   # (B, T, E)
    B, T, _ = x.shape
    H = params["whh_t"].shape[0]
    h = jnp.zeros((B, H), jnp.float32)
    for t in range(T):
        h_new = jnp.tanh(x[:, t] @ params["wih_t"] + h @ params["whh_t"]
                         + params["bias"])
        h = jnp.where((t < seq_len)[:, None], h_new, h)
    return (h @ params["wfc_t"] + params["bfc"])[:, :num_labels]


if __name__ == "__main__":
    # Small config consistent with the module's args.
    VOCAB, EMBED, HIDDEN, LABELS, PAD = 50, 32, 32, 4, 0
    B, T = 4, 8

    key = jax.random.PRNGKey(0)
    k_par, k_ids = jax.random.split(key, 2)

    params = init_params(k_par, VOCAB, EMBED, HIDDEN, LABELS, PAD)

    input_ids = jax.random.randint(k_ids, (B, T), 1, VOCAB, dtype=jnp.int32)
    seq_len = jnp.array([8, 5, 3, 6], dtype=jnp.int32)   # lengths in [1, T]
    # zero out padding positions in input_ids (like real padded batches)
    pad_mask = jnp.arange(T)[None, :] < seq_len[:, None]
    input_ids = jnp.where(pad_mask, input_ids, PAD)

    logits = nlp_rnn_forward(input_ids, seq_len, params, num_labels=LABELS)
    logits = jax.block_until_ready(logits)

    ref = reference_forward(input_ids, seq_len, params, LABELS)
    assert logits.shape == (B, LABELS)
    assert jnp.allclose(logits, ref, atol=1e-4, rtol=1e-4), (logits, ref)

    # TODO(synk): CrossEntropyLoss branch (labels is not None) left to plain JAX;
    # the forward used here corresponds to labels=None (loss=None).
    print("KERNEL_OK")
</pallas_src>

<mosaic_0001>
module attributes {stable_mosaic.version = 11 : i64} {
  func.func @rnn_fwd_kernel(%arg0: i32, %arg1: memref<8x8xi32, #tpu.memory_space<vmem>>, %arg2: memref<8x1xi32, #tpu.memory_space<vmem>>, %arg3: memref<128x32xf32, #tpu.memory_space<vmem>>, %arg4: memref<32x32xf32, #tpu.memory_space<vmem>>, %arg5: memref<32x128xf32, #tpu.memory_space<vmem>>, %arg6: memref<1x128xf32, #tpu.memory_space<vmem>>, %arg7: memref<8x128xf32, #tpu.memory_space<vmem>>) attributes {dimension_semantics = [#tpu.dimension_semantics<parallel>], iteration_bounds = array<i64: 1>, scalar_prefetch = 0 : i64, scratch_operands = 0 : i64, tpu.core_type = #tpu.core_type<tc>, window_params = [{transform_indices = @transform_0, window_bounds = array<i64: 8, 8>}, {transform_indices = @transform_1, window_bounds = array<i64: 8, 1>}, {pipeline_mode = #tpu.pipeline_mode<synchronous>, transform_indices = @transform_2, window_bounds = array<i64: 128, 32>}, {pipeline_mode = #tpu.pipeline_mode<synchronous>, transform_indices = @transform_3, window_bounds = array<i64: 32, 32>}, {pipeline_mode = #tpu.pipeline_mode<synchronous>, transform_indices = @transform_4, window_bounds = array<i64: 32, 128>}, {pipeline_mode = #tpu.pipeline_mode<synchronous>, transform_indices = @transform_5, window_bounds = array<i64: 1, 128>}, {transform_indices = @transform_6, window_bounds = array<i64: 8, 128>}]} {
    %c0 = arith.constant 0 : index
    %c0_0 = arith.constant 0 : index
    %0 = vector.load %arg1[%c0, %c0_0] : memref<8x8xi32, #tpu.memory_space<vmem>>, vector<8x8xi32>
    %c0_1 = arith.constant 0 : index
    %c0_2 = arith.constant 0 : index
    %1 = vector.load %arg3[%c0_1, %c0_2] : memref<128x32xf32, #tpu.memory_space<vmem>>, vector<128x32xf32>
    %c0_3 = arith.constant 0 : index
    %c0_4 = arith.constant 0 : index
    %2 = vector.load %arg4[%c0_3, %c0_4] : memref<32x32xf32, #tpu.memory_space<vmem>>, vector<32x32xf32>
    %3 = tpu.iota {dimensions = array<i32: 1>} : vector<8x128xi32>
    %4 = vector.extract_strided_slice %0 {offsets = [0, 0], sizes = [8, 1], strides = [1, 1]} : vector<8x8xi32> to vector<8x1xi32>
    %5 = vector.broadcast %4 : vector<8x1xi32> to vector<8x128xi32>
    %6 = arith.cmpi eq, %5, %3 : vector<8x128xi32>
    %7 = arith.extui %6 : vector<8x128xi1> to vector<8x128xi32>
    %8 = arith.sitofp %7 : vector<8x128xi32> to vector<8x128xf32>
    %cst = arith.constant dense<0.000000e+00> : vector<8x32xf32>
    %9 = tpu.matmul %8, %1, %cst {dimension_numbers = #tpu.dot_dimension_numbers<[1], [0], [0], [1], [0, 0, 1, 1], [], []>} : vector<8x128xf32>, vector<128x32xf32>, vector<8x32xf32> -> vector<8x32xf32>
    %10 = vector.extract_strided_slice %0 {offsets = [0, 1], sizes = [8, 1], strides = [1, 1]} : vector<8x8xi32> to vector<8x1xi32>
    %11 = vector.broadcast %10 : vector<8x1xi32> to vector<8x128xi32>
    %12 = arith.cmpi eq, %11, %3 : vector<8x128xi32>
    %13 = arith.extui %12 : vector<8x128xi1> to vector<8x128xi32>
    %14 = arith.sitofp %13 : vector<8x128xi32> to vector<8x128xf32>
    %cst_5 = arith.constant dense<0.000000e+00> : vector<8x32xf32>
    %15 = tpu.matmul %14, %1, %cst_5 {dimension_numbers = #tpu.dot_dimension_numbers<[1], [0], [0], [1], [0, 0, 1, 1], [], []>} : vector<8x128xf32>, vector<128x32xf32>, vector<8x32xf32> -> vector<8x32xf32>
    %16 = vector.extract_strided_slice %0 {offsets = [0, 2], sizes = [8, 1], strides = [1, 1]} : vector<8x8xi32> to vector<8x1xi32>
    %17 = vector.broadcast %16 : vector<8x1xi32> to vector<8x128xi32>
    %18 = arith.cmpi eq, %17, %3 : vector<8x128xi32>
    %19 = arith.extui %18 : vector<8x128xi1> to vector<8x128xi32>
    %20 = arith.sitofp %19 : vector<8x128xi32> to vector<8x128xf32>
    %cst_6 = arith.constant dense<0.000000e+00> : vector<8x32xf32>
    %21 = tpu.matmul %20, %1, %cst_6 {dimension_numbers = #tpu.dot_dimension_numbers<[1], [0], [0], [1], [0, 0, 1, 1], [], []>} : vector<8x128xf32>, vector<128x32xf32>, vector<8x32xf32> -> vector<8x32xf32>
    %22 = vector.extract_strided_slice %0 {offsets = [0, 3], sizes = [8, 1], strides = [1, 1]} : vector<8x8xi32> to vector<8x1xi32>
    %23 = vector.broadcast %22 : vector<8x1xi32> to vector<8x128xi32>
    %24 = arith.cmpi eq, %23, %3 : vector<8x128xi32>
    %25 = arith.extui %24 : vector<8x128xi1> to vector<8x128xi32>
    %26 = arith.sitofp %25 : vector<8x128xi32> to vector<8x128xf32>
    %cst_7 = arith.constant dense<0.000000e+00> : vector<8x32xf32>
    %27 = tpu.matmul %26, %1, %cst_7 {dimension_numbers = #tpu.dot_dimension_numbers<[1], [0], [0], [1], [0, 0, 1, 1], [], []>} : vector<8x128xf32>, vector<128x32xf32>, vector<8x32xf32> -> vector<8x32xf32>
    %28 = vector.extract_strided_slice %0 {offsets = [0, 4], sizes = [8, 1], strides = [1, 1]} : vector<8x8xi32> to vector<8x1xi32>
    %29 = vector.broadcast %28 : vector<8x1xi32> to vector<8x128xi32>
    %30 = arith.cmpi eq, %29, %3 : vector<8x128xi32>
    %31 = arith.extui %30 : vector<8x128xi1> to vector<8x128xi32>
    %32 = arith.sitofp %31 : vector<8x128xi32> to vector<8x128xf32>
    %cst_8 = arith.constant dense<0.000000e+00> : vector<8x32xf32>
    %33 = tpu.matmul %32, %1, %cst_8 {dimension_numbers = #tpu.dot_dimension_numbers<[1], [0], [0], [1], [0, 0, 1, 1], [], []>} : vector<8x128xf32>, vector<128x32xf32>, vector<8x32xf32> -> vector<8x32xf32>
    %34 = vector.extract_strided_slice %0 {offsets = [0, 5], sizes = [8, 1], strides = [1, 1]} : vector<8x8xi32> to vector<8x1xi32>
    %35 = vector.broadcast %34 : vector<8x1xi32> to vector<8x128xi32>
    %36 = arith.cmpi eq, %35, %3 : vector<8x128xi32>
    %37 = arith.extui %36 : vector<8x128xi1> to vector<8x128xi32>
    %38 = arith.sitofp %37 : vector<8x128xi32> to vector<8x128xf32>
    %cst_9 = arith.constant dense<0.000000e+00> : vector<8x32xf32>
    %39 = tpu.matmul %38, %1, %cst_9 {dimension_numbers = #tpu.dot_dimension_numbers<[1], [0], [0], [1], [0, 0, 1, 1], [], []>} : vector<8x128xf32>, vector<128x32xf32>, vector<8x32xf32> -> vector<8x32xf32>
    %40 = vector.extract_strided_slice %0 {offsets = [0, 6], sizes = [8, 1], strides = [1, 1]} : vector<8x8xi32> to vector<8x1xi32>
    %41 = vector.broadcast %40 : vector<8x1xi32> to vector<8x128xi32>
    %42 = arith.cmpi eq, %41, %3 : vector<8x128xi32>
    %43 = arith.extui %42 : vector<8x128xi1> to vector<8x128xi32>
    %44 = arith.sitofp %43 : vector<8x128xi32> to vector<8x128xf32>
    %cst_10 = arith.constant dense<0.000000e+00> : vector<8x32xf32>
    %45 = tpu.matmul %44, %1, %cst_10 {dimension_numbers = #tpu.dot_dimension_numbers<[1], [0], [0], [1], [0, 0, 1, 1], [], []>} : vector<8x128xf32>, vector<128x32xf32>, vector<8x32xf32> -> vector<8x32xf32>
    %46 = vector.extract_strided_slice %0 {offsets = [0, 7], sizes = [8, 1], strides = [1, 1]} : vector<8x8xi32> to vector<8x1xi32>
    %47 = vector.broadcast %46 : vector<8x1xi32> to vector<8x128xi32>
    %48 = arith.cmpi eq, %47, %3 : vector<8x128xi32>
    %49 = arith.extui %48 : vector<8x128xi1> to vector<8x128xi32>
    %50 = arith.sitofp %49 : vector<8x128xi32> to vector<8x128xf32>
    %cst_11 = arith.constant dense<0.000000e+00> : vector<8x32xf32>
    %51 = tpu.matmul %50, %1, %cst_11 {dimension_numbers = #tpu.dot_dimension_numbers<[1], [0], [0], [1], [0, 0, 1, 1], [], []>} : vector<8x128xf32>, vector<128x32xf32>, vector<8x32xf32> -> vector<8x32xf32>
    %c0_12 = arith.constant 0 : index
    %c0_13 = arith.constant 0 : index
    %52 = vector.load %arg2[%c0_12, %c0_13] : memref<8x1xi32, #tpu.memory_space<vmem>>, vector<8x1xi32>
    %53 = vector.shape_cast %52 : vector<8x1xi32> to vector<8x1xi32>
    %54 = vector.broadcast %53 : vector<8x1xi32> to vector<8x32xi32>
    %cst_14 = arith.constant 0.000000e+00 : f32
    %55 = vector.broadcast %cst_14 : f32 to vector<8x32xf32>
    %cst_15 = arith.constant dense<0.000000e+00> : vector<8x32xf32>
    %56 = tpu.matmul %55, %2, %cst_15 {dimension_numbers = #tpu.dot_dimension_numbers<[1], [0], [0], [1], [0, 0, 1, 1], [], []>} : vector<8x32xf32>, vector<32x32xf32>, vector<8x32xf32> -> vector<8x32xf32>
    %57 = arith.addf %9, %56 : vector<8x32xf32>
    %58 = math.tanh %57 : vector<8x32xf32>
    %c0_i32 = arith.constant 0 : i32
    %59 = vector.broadcast %c0_i32 : i32 to vector<8x32xi32>
    %60 = arith.cmpi sgt, %54, %59 : vector<8x32xi32>
    %61 = arith.select %60, %58, %55 : vector<8x32xi1>, vector<8x32xf32>
    %cst_16 = arith.constant dense<0.000000e+00> : vector<8x32xf32>
    %62 = tpu.matmul %61, %2, %cst_16 {dimension_numbers = #tpu.dot_dimension_numbers<[1], [0], [0], [1], [0, 0, 1, 1], [], []>} : vector<8x32xf32>, vector<32x32xf32>, vector<8x32xf32> -> vector<8x32xf32>
    %63 = arith.addf %15, %62 : vector<8x32xf32>
    %64 = math.tanh %63 : vector<8x32xf32>
    %c1_i32 = arith.constant 1 : i32
    %65 = vector.broadcast %c1_i32 : i32 to vector<8x32xi32>
    %66 = arith.cmpi sgt, %54, %65 : vector<8x32xi32>
    %67 = arith.select %66, %64, %61 : vector<8x32xi1>, vector<8x32xf32>
    %cst_17 = arith.constant dense<0.000000e+00> : vector<8x32xf32>
    %68 = tpu.matmul %67, %2, %cst_17 {dimension_numbers = #tpu.dot_dimension_numbers<[1], [0], [0], [1], [0, 0, 1, 1], [], []>} : vector<8x32xf32>, vector<32x32xf32>, vector<8x32xf32> -> vector<8x32xf32>
    %69 = arith.addf %21, %68 : vector<8x32xf32>
    %70 = math.tanh %69 : vector<8x32xf32>
    %c2_i32 = arith.constant 2 : i32
    %71 = vector.broadcast %c2_i32 : i32 to vector<8x32xi32>
    %72 = arith.cmpi sgt, %54, %71 : vector<8x32xi32>
    %73 = arith.select %72, %70, %67 : vector<8x32xi1>, vector<8x32xf32>
    %cst_18 = arith.constant dense<0.000000e+00> : vector<8x32xf32>
    %74 = tpu.matmul %73, %2, %cst_18 {dimension_numbers = #tpu.dot_dimension_numbers<[1], [0], [0], [1], [0, 0, 1, 1], [], []>} : vector<8x32xf32>, vector<32x32xf32>, vector<8x32xf32> -> vector<8x32xf32>
    %75 = arith.addf %27, %74 : vector<8x32xf32>
    %76 = math.tanh %75 : vector<8x32xf32>
    %c3_i32 = arith.constant 3 : i32
    %77 = vector.broadcast %c3_i32 : i32 to vector<8x32xi32>
    %78 = arith.cmpi sgt, %54, %77 : vector<8x32xi32>
    %79 = arith.select %78, %76, %73 : vector<8x32xi1>, vector<8x32xf32>
    %cst_19 = arith.constant dense<0.000000e+00> : vector<8x32xf32>
    %80 = tpu.matmul %79, %2, %cst_19 {dimension_numbers = #tpu.dot_dimension_numbers<[1], [0], [0], [1], [0, 0, 1, 1], [], []>} : vector<8x32xf32>, vector<32x32xf32>, vector<8x32xf32> -> vector<8x32xf32>
    %81 = arith.addf %33, %80 : vector<8x32xf32>
    %82 = math.tanh %81 : vector<8x32xf32>
    %c4_i32 = arith.constant 4 : i32
    %83 = vector.broadcast %c4_i32 : i32 to vector<8x32xi32>
    %84 = arith.cmpi sgt, %54, %83 : vector<8x32xi32>
    %85 = arith.select %84, %82, %79 : vector<8x32xi1>, vector<8x32xf32>
    %cst_20 = arith.constant dense<0.000000e+00> : vector<8x32xf32>
    %86 = tpu.matmul %85, %2, %cst_20 {dimension_numbers = #tpu.dot_dimension_numbers<[1], [0], [0], [1], [0, 0, 1, 1], [], []>} : vector<8x32xf32>, vector<32x32xf32>, vector<8x32xf32> -> vector<8x32xf32>
    %87 = arith.addf %39, %86 : vector<8x32xf32>
    %88 = math.tanh %87 : vector<8x32xf32>
    %c5_i32 = arith.constant 5 : i32
    %89 = vector.broadcast %c5_i32 : i32 to vector<8x32xi32>
    %90 = arith.cmpi sgt, %54, %89 : vector<8x32xi32>
    %91 = arith.select %90, %88, %85 : vector<8x32xi1>, vector<8x32xf32>
    %cst_21 = arith.constant dense<0.000000e+00> : vector<8x32xf32>
    %92 = tpu.matmul %91, %2, %cst_21 {dimension_numbers = #tpu.dot_dimension_numbers<[1], [0], [0], [1], [0, 0, 1, 1], [], []>} : vector<8x32xf32>, vector<32x32xf32>, vector<8x32xf32> -> vector<8x32xf32>
    %93 = arith.addf %45, %92 : vector<8x32xf32>
    %94 = math.tanh %93 : vector<8x32xf32>
    %c6_i32 = arith.constant 6 : i32
    %95 = vector.broadcast %c6_i32 : i32 to vector<8x32xi32>
    %96 = arith.cmpi sgt, %54, %95 : vector<8x32xi32>
    %97 = arith.select %96, %94, %91 : vector<8x32xi1>, vector<8x32xf32>
    %cst_22 = arith.constant dense<0.000000e+00> : vector<8x32xf32>
    %98 = tpu.matmul %97, %2, %cst_22 {dimension_numbers = #tpu.dot_dimension_numbers<[1], [0], [0], [1], [0, 0, 1, 1], [], []>} : vector<8x32xf32>, vector<32x32xf32>, vector<8x32xf32> -> vector<8x32xf32>
    %99 = arith.addf %51, %98 : vector<8x32xf32>
    %100 = math.tanh %99 : vector<8x32xf32>
    %c7_i32 = arith.constant 7 : i32
    %101 = vector.broadcast %c7_i32 : i32 to vector<8x32xi32>
    %102 = arith.cmpi sgt, %54, %101 : vector<8x32xi32>
    %103 = arith.select %102, %100, %97 : vector<8x32xi1>, vector<8x32xf32>
    %c0_23 = arith.constant 0 : index
    %c0_24 = arith.constant 0 : index
    %104 = vector.load %arg5[%c0_23, %c0_24] : memref<32x128xf32, #tpu.memory_space<vmem>>, vector<32x128xf32>
    %cst_25 = arith.constant dense<0.000000e+00> : vector<8x128xf32>
    %105 = tpu.matmul %103, %104, %cst_25 {dimension_numbers = #tpu.dot_dimension_numbers<[1], [0], [0], [1], [0, 0, 1, 1], [], []>} : vector<8x32xf32>, vector<32x128xf32>, vector<8x128xf32> -> vector<8x128xf32>
    %c0_26 = arith.constant 0 : index
    %c0_27 = arith.constant 0 : index
    %106 = vector.load %arg6[%c0_26, %c0_27] : memref<1x128xf32, #tpu.memory_space<vmem>>, vector<1x128xf32>
    %107 = vector.broadcast %106 : vector<1x128xf32> to vector<8x128xf32>
    %108 = arith.addf %105, %107 : vector<8x128xf32>
    %c0_28 = arith.constant 0 : index
    %c0_29 = arith.constant 0 : index
    %109 = vector.load %arg7[%c0_28, %c0_29] : memref<8x128xf32, #tpu.memory_space<vmem>>, vector<8x128xf32>
    tpu.vector_store %arg7[%c0_28, %c0_29], %108 {strides = array<i32>} : memref<8x128xf32, #tpu.memory_space<vmem>>, vector<8x128xf32>,
    return
  }
  func.func @transform_0(%arg0: i32) -> (i32, i32) {
    %c0_i32 = arith.constant 0 : i32
    %c0_i32_0 = arith.constant 0 : i32
    return %arg0, %c0_i32 : i32, i32
  }
  func.func @transform_1(%arg0: i32) -> (i32, i32) {
    %c0_i32 = arith.constant 0 : i32
    %c0_i32_0 = arith.constant 0 : i32
    return %arg0, %c0_i32 : i32, i32
  }
  func.func @transform_2(%arg0: i32) -> (i32, i32) {
    %c0_i32 = arith.constant 0 : i32
    %c0_i32_0 = arith.constant 0 : i32
    %c0_i32_1 = arith.constant 0 : i32
    return %c0_i32, %c0_i32_0 : i32, i32
  }
  func.func @transform_3(%arg0: i32) -> (i32, i32) {
    %c0_i32 = arith.constant 0 : i32
    %c0_i32_0 = arith.constant 0 : i32
    %c0_i32_1 = arith.constant 0 : i32
    return %c0_i32, %c0_i32_0 : i32, i32
  }
  func.func @transform_4(%arg0: i32) -> (i32, i32) {
    %c0_i32 = arith.constant 0 : i32
    %c0_i32_0 = arith.constant 0 : i32
    %c0_i32_1 = arith.constant 0 : i32
    return %c0_i32, %c0_i32_0 : i32, i32
  }
  func.func @transform_5(%arg0: i32) -> (i32, i32) {
    %c0_i32 = arith.constant 0 : i32
    %c0_i32_0 = arith.constant 0 : i32
    %c0_i32_1 = arith.constant 0 : i32
    return %c0_i32, %c0_i32_0 : i32, i32
  }
  func.func @transform_6(%arg0: i32) -> (i32, i32) {
    %c0_i32 = arith.constant 0 : i32
    %c0_i32_0 = arith.constant 0 : i32
    return %arg0, %c0_i32 : i32, i32
  }
}

</mosaic_0001>

<bundles_post_ra>
// kernel: nlp_rnn_forward.1
= control target key start
LH: loop header
LB: loop body
LE: loop exit
PB: predicated region body
PF: predicated region fallthrough
CT: control target
= control target key end

     0   :  { %v2240_v0 = vmov 0   ;;  %v2241_v2 = vmov 0.0|0.0   ;;  %vm2242_vm0 = vmmov 0   ;;  %v2243_v7 = vmov 0.0   ;;  %s2636_s0 = inlined_call_operand.vmem [shape: s32[8,8], index: 0, kind: input, shape index: {}]   ;;  %s2637_s1 = inlined_call_operand.vmem [shape: s32[8,1], index: 1, kind: input, shape index: {}]   ;;  %s2638_s3 = inlined_call_operand.vmem [shape: f32[32,32], index: 3, kind: input, shape index: {}]   ;;  %s2639_s2 = inlined_call_operand.vmem [shape: f32[128,32], index: 2, kind: input, shape index: {}]   ;;  %s2640_s4 = inlined_call_operand.vmem [shape: f32[32,128], index: 4, kind: input, shape index: {}]   ;;  %s2641_s5 = inlined_call_operand.vmem [shape: f32[1,128], index: 5, kind: input, shape index: {}]   ;;  %s2642_s6 = inlined_call_operand.vmem [shape: f32[8,128], index: 6, kind: output, shape index: {}]  }
   0x1   :  { %2215 = vset.pattern.permute.xlu0 %v2240_v0  ;;  %v2291_v1 = vld [vmem:[%s2636_s0] sm:$0xff]  ;;  %1941 = vmatprep.subr.bf16.mxu0 %v2241_v2  ;;  %v41_v4 = vld [vmem:[%s2638_s3 + $0x8] sm:$0xff]  ;;  %v42_v5 = vld [vmem:[%s2638_s3 + $0x10] sm:$0xff]  ;;  %v2244_v13 = vmov 1   ;;  %v44_v36 = vlaneseq  ;;  %v2245_v39 = vmov 1.0   ;;  %v2246_v40 = vmov 2  }
   0x2   :  { %v40_v3 = vld [vmem:[%s2638_s3] sm:$0xff]  ;;  %47 = vperm.xlu0 %2215, %v2291_v1   ;;  %v43_v6 = vld [vmem:[%s2638_s3 + $0x18] sm:$0xff]  ;;  %1570 = vmatprep.mubr.msk.f32.mxu0 %vm2242_vm0, %v2243_v7  ;;  %v25_v12 = vld [vmem:[%s2639_s2 + $0x8] sm:$0xff]  ;;  %vm98_vm2 = vcmask 261120   ;;  %v2247_v47 = vmov 3   ;;  %v2248_v53 = vmov 4  }
   0x3   :  { %v94_v8 = vld [vmem:[%s2637_s1] sm:$0xff]  ;;  %v2312_v9 = vpack.c.bf16 %v41_v4, %v40_v3  ;;  %1971 = vmatprep.subr.bf16.mxu1 %v2241_v2  ;;  %1616 = vmatprep.mubr.msk.f32.mxu1 %vm2242_vm0, %v2243_v7  ;;  %v2318_v10 = vpack.c.bf16 %v43_v6, %v42_v5  ;;  %v26_v15 = vld [vmem:[%s2639_s2 + $0x10] sm:$0xff]  ;;  %v27_v16 = vld [vmem:[%s2639_s2 + $0x18] sm:$0xff]  ;;  %v2411_v37 = vand.u32 127, %v44_v36  ;;  %v2249_v59 = vmov 5  }
   0x4   :  { %v24_v11 = vld [vmem:[%s2639_s2] sm:$0xff]  ;;  %2216 = vset.pattern.permute.xlu1 %v2244_v13  ;;  %v2344_v17 = vpack.c.bf16 %v27_v16, %v26_v15  ;;  %v29_v19 = vld [vmem:[%s2639_s2 + $0x28] sm:$0xff]  ;;  %v30_v21 = vld [vmem:[%s2639_s2 + $0x30] sm:$0xff]  ;;  %v2250_v4 = vmov 6  }
   0x5   :  { %1943 = vmatpush3.bf16.msra.mxu0 %v2312_v9  ;;  %1973 = vmatpush3.bf16.msra.mxu1 %v2312_v9  ;;  %v2331_v14 = vpack.c.bf16 %v25_v12, %v24_v11  ;;  %v28_v18 = vld [vmem:[%s2639_s2 + $0x20] sm:$0xff]  ;;  %v31_v22 = vld [vmem:[%s2639_s2 + $0x38] sm:$0xff]  ;;  %v33_v25 = vld [vmem:[%s2639_s2 + $0x48] sm:$0xff]  ;;  %v2251_v12 = vmov 7  }
   0x6   :  { %96 = vperm.xlu0 %2215, %v94_v8   ;;  %1944 = vmatprep.subr.bf16.mxu0 %v2241_v2  ;;  %v2356_v20 = vpack.c.bf16 %v29_v19, %v28_v18  ;;  %v2366_v23 = vpack.c.bf16 %v31_v22, %v30_v21  ;;  %v32_v24 = vld [vmem:[%s2639_s2 + $0x40] sm:$0xff]  ;;  %v34_v27 = vld [vmem:[%s2639_s2 + $0x50] sm:$0xff]  ;;  %v35_v28 = vld [vmem:[%s2639_s2 + $0x58] sm:$0xff] }
   0x7   :  { %1974 = vmatprep.subr.bf16.mxu1 %v2241_v2  ;;  %53 = vperm.xlu1 %2216, %v2291_v1   ;;  %v2376_v26 = vpack.c.bf16 %v33_v25, %v32_v24  ;;  %v2386_v29 = vpack.c.bf16 %v35_v28, %v34_v27  ;;  %v36_v30 = vld [vmem:[%s2639_s2 + $0x60] sm:$0xff]  ;;  %v37_v31 = vld [vmem:[%s2639_s2 + $0x68] sm:$0xff]  ;;  %v38_v33 = vld [vmem:[%s2639_s2 + $0x70] sm:$0xff] }
   0x8   :  { %v2396_v32 = vpack.c.bf16 %v37_v31, %v36_v30  ;;  %v39_v34 = vld [vmem:[%s2639_s2 + $0x78] sm:$0xff] }
   0x9   :  { %1946 = vmatpush3.bf16.msra.mxu0 %v2318_v10  ;;  %1976 = vmatpush3.bf16.msra.mxu1 %v2318_v10  ;;  %v2406_v35 = vpack.c.bf16 %v39_v34, %v38_v33 }
   0xa   :  { %1947 = vmatprep.subr.bf16.mxu0 %v2241_v2  ;;  %1977 = vmatprep.subr.bf16.mxu1 %v2241_v2 }
   0xb   :  { %2217 = vset.pattern.permute.xlu1 %v2246_v40  ;;  %2218 = vset.pattern.permute.xlu0 %v2247_v47 }
   0xc   :  { %1571 = vmatmul.mubr.f32.vlgmr.msra.gmra.mrb[0].mxu0 %v2243_v7  ;;  %59 = vperm.xlu1 %2217, %v2291_v1  }
   0xd   :  { %1949 = vmatpush3.bf16.msra.mxu0 %v2331_v14  ;;  %1605 = vmatprep.mubr.msk.f32.mxu0 %vm2242_vm0, %v2243_v7 }
   0xe   :  { %1950 = vmatprep.subr.bf16.mxu0 %v2241_v2  ;;  %65 = vperm.xlu0 %2218, %v2291_v1  }
  0x10   :  { %2219 = vset.pattern.permute.xlu1 %v2248_v53 }
  0x11   :  { %1952 = vmatpush3.bf16.msra.mxu0 %v2344_v17  ;;  %71 = vperm.xlu1 %2219, %v2291_v1  }
  0x12   :  { %1953 = vmatprep.subr.bf16.mxu0 %v2241_v2  ;;  %2221 = vset.pattern.permute.xlu0 %v2250_v4 }
  0x13   :  { %83 = vperm.xlu0 %2221, %v2291_v1  }
  0x15   :  { %1955 = vmatpush3.bf16.msra.mxu0 %v2356_v20  ;;  %2220 = vset.pattern.permute.xlu1 %v2249_v59 }
  0x16   :  { %1956 = vmatprep.subr.bf16.mxu0 %v2241_v2  ;;  %77 = vperm.xlu1 %2220, %v2291_v1  }
  0x17   :  { %2223 = vset.pattern.permute.xlu0 %v2240_v0 }
  0x19   :  { %1958 = vmatpush3.bf16.msra.mxu0 %v2366_v23 }
  0x1a   :  { %1959 = vmatprep.subr.bf16.mxu0 %v2241_v2  ;;  %2222 = vset.pattern.permute.xlu1 %v2251_v12 }
  0x1b   :  { %89 = vperm.xlu1 %2222, %v2291_v1  }
  0x1d   :  { %1961 = vmatpush3.bf16.msra.mxu0 %v2376_v26 }
  0x1e   :  { %1962 = vmatprep.subr.bf16.mxu0 %v2241_v2 }
  0x21   :  { %1964 = vmatpush3.bf16.msra.mxu0 %v2386_v29 }
  0x22   :  { %1965 = vmatprep.subr.bf16.mxu0 %v2241_v2 }
  0x25   :  { %1967 = vmatpush3.bf16.msra.mxu0 %v2396_v32 }
  0x26   :  { %1968 = vmatprep.subr.bf16.mxu0 %v2241_v2 }
  0x29   :  { %1970 = vmatpush3.bf16.msra.mxu0 %v2406_v35 }
  0x2a   :  { %2001 = vmatprep.subr.bf16.mxu0 %v2241_v2 }
  0x81   :  { %v48_v38 = vpop.permute.xlu0 %47 }
  0x82   :  { %vm49_vm1 = vcmp.eq.s32.totalorder %v48_v38, %v2411_v37 }
  0x83   :  { %1606 = vmatmul.mubr.msk.f32.vlgmr.msra.gmra.mrb[0].mxu0 %vm49_vm1, %v2245_v39 }
  0x84   :  { %2003 = vmatpush3.bf16.msra.mxu0 %v2312_v9  ;;  %1662 = vmatprep.mubr.msk.f32.mxu0 %vm2242_vm0, %v2243_v7 }
  0x85   :  { %2004 = vmatprep.subr.bf16.mxu0 %v2241_v2  ;;  %v2422_v43 = vpop.permute.xlu0 %96 }
  0x86   :  { %vm243_vm3 = vcmp.gt.s32.totalorder %v2422_v43, 0  ;;  %v54_v46 = vpop.permute.xlu1 %53  ;;  %vm389_vm5 = vcmp.gt.s32.totalorder %v2422_v43, 1  ;;  %vm535_vm7 = vcmp.gt.s32.totalorder %v2422_v43, 2  ;;  %vm681_vm9 = vcmp.gt.s32.totalorder %v2422_v43, 3 }
  0x87   :  { %vm55_vm4 = vcmp.eq.s32.totalorder %v54_v46, %v2411_v37  ;;  %vm827_vm11 = vcmp.gt.s32.totalorder %v2422_v43, 4  ;;  %vm973_vm13 = vcmp.gt.s32.totalorder %v2422_v43, 5  ;;  %vm1119_vm15 = vcmp.gt.s32.totalorder %v2422_v43, 6 }
  0x88   :  { %2006 = vmatpush3.bf16.msra.mxu0 %v2318_v10  ;;  %vm1265_vm1 = vcmp.gt.s32.totalorder %v2422_v43, 7 }
  0x89   :  { %2007 = vmatprep.subr.bf16.mxu0 %v2241_v2 }
  0x8b   :  { %v60_v52 = vpop.permute.xlu1 %59 }
  0x8c   :  { %vm61_vm6 = vcmp.eq.s32.totalorder %v60_v52, %v2411_v37 }
  0x8d   :  { %v66_v58 = vpop.permute.xlu0 %65 }
  0x8e   :  { %vm67_vm8 = vcmp.eq.s32.totalorder %v66_v58, %v2411_v37 }
  0x90   :  { %v72_v3 = vpop.permute.xlu1 %71 }
  0x91   :  { %vm73_vm10 = vcmp.eq.s32.totalorder %v72_v3, %v2411_v37 }
  0x92   :  { %v84_v1 = vpop.permute.xlu0 %83 }
  0x93   :  { %vm85_vm14 = vcmp.eq.s32.totalorder %v84_v1, %v2411_v37 }
  0x95   :  { %v78_v0 = vpop.permute.xlu1 %77 }
  0x96   :  { %vm79_vm12 = vcmp.eq.s32.totalorder %v78_v0, %v2411_v37 }
 0x156   :  { %v238_v41 = vpop.f32.mrb[0].mxu0 }
 0x157   :  { %2224 = vtanh.f32 %v238_v41  ;;  %v1607_v42 = vpop.f32.mrb[1].mxu0 }
 0x161   :  { %v2225_v44 = vpop.eup %2224 }
 0x162   :  { %v244_v45 = vsel %vm243_vm3, %v2225_v44, 0.0 }
 0x163   :  { %1617 = vmatmul.mubr.msk.f32.vlgmr.msra.gmra.mrb[0].mxu1 %vm98_vm2, %v244_v45 }
 0x164   :  { %1979 = vmatpush3.bf16.msra.mxu1 %v2331_v14  ;;  %1651 = vmatprep.mubr.msk.f32.mxu1 %vm2242_vm0, %v2243_v7 }
 0x165   :  { %1980 = vmatprep.subr.bf16.mxu1 %v2241_v2 }
 0x168   :  { %1982 = vmatpush3.bf16.msra.mxu1 %v2344_v17 }
 0x169   :  { %1983 = vmatprep.subr.bf16.mxu1 %v2241_v2 }
 0x16c   :  { %1985 = vmatpush3.bf16.msra.mxu1 %v2356_v20 }
 0x16d   :  { %1986 = vmatprep.subr.bf16.mxu1 %v2241_v2 }
 0x170   :  { %1988 = vmatpush3.bf16.msra.mxu1 %v2366_v23 }
 0x171   :  { %1989 = vmatprep.subr.bf16.mxu1 %v2241_v2 }
 0x174   :  { %1991 = vmatpush3.bf16.msra.mxu1 %v2376_v26 }
 0x175   :  { %1992 = vmatprep.subr.bf16.mxu1 %v2241_v2 }
 0x178   :  { %1994 = vmatpush3.bf16.msra.mxu1 %v2386_v29 }
 0x179   :  { %1995 = vmatprep.subr.bf16.mxu1 %v2241_v2 }
 0x17c   :  { %1997 = vmatpush3.bf16.msra.mxu1 %v2396_v32 }
 0x17d   :  { %1998 = vmatprep.subr.bf16.mxu1 %v2241_v2 }
 0x180   :  { %2000 = vmatpush3.bf16.msra.mxu1 %v2406_v35 }
 0x181   :  { %2031 = vmatprep.subr.bf16.mxu1 %v2241_v2 }
 0x183   :  { %1652 = vmatmul.mubr.msk.f32.vlgmr.msra.gmra.mrb[0].mxu1 %vm55_vm4, %v2245_v39 }
 0x184   :  { %2033 = vmatpush3.bf16.msra.mxu1 %v2312_v9  ;;  %1708 = vmatprep.mubr.msk.f32.mxu1 %vm2242_vm0, %v2243_v7 }
 0x185   :  { %2034 = vmatprep.subr.bf16.mxu1 %v2241_v2 }
 0x188   :  { %2036 = vmatpush3.bf16.msra.mxu1 %v2318_v10 }
 0x189   :  { %2037 = vmatprep.subr.bf16.mxu1 %v2241_v2 }
 0x256   :  { %v384_v48 = vpop.f32.mrb[0].mxu1 }
 0x257   :  { %2226 = vtanh.f32 %v384_v48  ;;  %v1653_v49 = vpop.f32.mrb[1].mxu1 }
 0x261   :  { %v2227_v50 = vpop.eup %2226 }
 0x262   :  { %v390_v51 = vsel %vm389_vm5, %v2227_v50, %v244_v45 }
 0x263   :  { %1663 = vmatmul.mubr.msk.f32.vlgmr.msra.gmra.mrb[2].mxu0 %vm98_vm2, %v390_v51 }
 0x264   :  { %2009 = vmatpush3.bf16.msra.mxu0 %v2331_v14  ;;  %1697 = vmatprep.mubr.msk.f32.mxu0 %vm2242_vm0, %v2243_v7 }
 0x265   :  { %2010 = vmatprep.subr.bf16.mxu0 %v2241_v2 }
 0x268   :  { %2012 = vmatpush3.bf16.msra.mxu0 %v2344_v17 }
 0x269   :  { %2013 = vmatprep.subr.bf16.mxu0 %v2241_v2 }
 0x26c   :  { %2015 = vmatpush3.bf16.msra.mxu0 %v2356_v20 }
 0x26d   :  { %2016 = vmatprep.subr.bf16.mxu0 %v2241_v2 }
 0x270   :  { %2018 = vmatpush3.bf16.msra.mxu0 %v2366_v23 }
 0x271   :  { %2019 = vmatprep.subr.bf16.mxu0 %v2241_v2 }
 0x274   :  { %2021 = vmatpush3.bf16.msra.mxu0 %v2376_v26 }
 0x275   :  { %2022 = vmatprep.subr.bf16.mxu0 %v2241_v2 }
 0x278   :  { %2024 = vmatpush3.bf16.msra.mxu0 %v2386_v29 }
 0x279   :  { %2025 = vmatprep.subr.bf16.mxu0 %v2241_v2 }
 0x27c   :  { %2027 = vmatpush3.bf16.msra.mxu0 %v2396_v32 }
 0x27d   :  { %2028 = vmatprep.subr.bf16.mxu0 %v2241_v2 }
 0x280   :  { %2030 = vmatpush3.bf16.msra.mxu0 %v2406_v35 }
 0x281   :  { %2061 = vmatprep.subr.bf16.mxu0 %v2241_v2 }
 0x283   :  { %1698 = vmatmul.mubr.msk.f32.vlgmr.msra.gmra.mrb[2].mxu0 %vm61_vm6, %v2245_v39 }
 0x284   :  { %2063 = vmatpush3.bf16.msra.mxu0 %v2312_v9  ;;  %1754 = vmatprep.mubr.msk.f32.mxu0 %vm2242_vm0, %v2243_v7 }
 0x285   :  { %2064 = vmatprep.subr.bf16.mxu0 %v2241_v2 }
 0x288   :  { %2066 = vmatpush3.bf16.msra.mxu0 %v2318_v10 }
 0x289   :  { %2067 = vmatprep.subr.bf16.mxu0 %v2241_v2 }
 0x356   :  { %v530_v54 = vpop.f32.mrb[2].mxu0 }
 0x357   :  { %2228 = vtanh.f32 %v530_v54  ;;  %v1699_v55 = vpop.f32.mrb[3].mxu0 }
 0x361   :  { %v2229_v56 = vpop.eup %2228 }
 0x362   :  { %v536_v57 = vsel %vm535_vm7, %v2229_v56, %v390_v51 }
 0x363   :  { %1709 = vmatmul.mubr.msk.f32.vlgmr.msra.gmra.mrb[2].mxu1 %vm98_vm2, %v536_v57 }
 0x364   :  { %2039 = vmatpush3.bf16.msra.mxu1 %v2331_v14  ;;  %1743 = vmatprep.mubr.msk.f32.mxu1 %vm2242_vm0, %v2243_v7 }
 0x365   :  { %2040 = vmatprep.subr.bf16.mxu1 %v2241_v2 }
 0x368   :  { %2042 = vmatpush3.bf16.msra.mxu1 %v2344_v17 }
 0x369   :  { %2043 = vmatprep.subr.bf16.mxu1 %v2241_v2 }
 0x36c   :  { %2045 = vmatpush3.bf16.msra.mxu1 %v2356_v20 }
 0x36d   :  { %2046 = vmatprep.subr.bf16.mxu1 %v2241_v2 }
 0x370   :  { %2048 = vmatpush3.bf16.msra.mxu1 %v2366_v23 }
 0x371   :  { %2049 = vmatprep.subr.bf16.mxu1 %v2241_v2 }
 0x374   :  { %2051 = vmatpush3.bf16.msra.mxu1 %v2376_v26 }
 0x375   :  { %2052 = vmatprep.subr.bf16.mxu1 %v2241_v2 }
 0x378   :  { %2054 = vmatpush3.bf16.msra.mxu1 %v2386_v29 }
 0x379   :  { %2055 = vmatprep.subr.bf16.mxu1 %v2241_v2 }
 0x37c   :  { %2057 = vmatpush3.bf16.msra.mxu1 %v2396_v32 }
 0x37d   :  { %2058 = vmatprep.subr.bf16.mxu1 %v2241_v2 }
 0x380   :  { %2060 = vmatpush3.bf16.msra.mxu1 %v2406_v35 }
 0x381   :  { %2091 = vmatprep.subr.bf16.mxu1 %v2241_v2 }
 0x383   :  { %1744 = vmatmul.mubr.msk.f32.vlgmr.msra.gmra.mrb[2].mxu1 %vm67_vm8, %v2245_v39 }
 0x384   :  { %2093 = vmatpush3.bf16.msra.mxu1 %v2312_v9  ;;  %1800 = vmatprep.mubr.msk.f32.mxu1 %vm2242_vm0, %v2243_v7 }
 0x385   :  { %2094 = vmatprep.subr.bf16.mxu1 %v2241_v2 }
 0x388   :  { %2096 = vmatpush3.bf16.msra.mxu1 %v2318_v10 }
 0x389   :  { %2097 = vmatprep.subr.bf16.mxu1 %v2241_v2 }
 0x456   :  { %v676_v60 = vpop.f32.mrb[2].mxu1 }
 0x457   :  { %2230 = vtanh.f32 %v676_v60  ;;  %v1745_v61 = vpop.f32.mrb[3].mxu1 }
 0x461   :  { %v2231_v62 = vpop.eup %2230 }
 0x462   :  { %v682_v63 = vsel %vm681_vm9, %v2231_v62, %v536_v57 }
 0x463   :  { %1755 = vmatmul.mubr.msk.f32.vlgmr.msra.gmra.mrb[4].mxu0 %vm98_vm2, %v682_v63 }
 0x464   :  { %2069 = vmatpush3.bf16.msra.mxu0 %v2331_v14  ;;  %1789 = vmatprep.mubr.msk.f32.mxu0 %vm2242_vm0, %v2243_v7 }
 0x465   :  { %2070 = vmatprep.subr.bf16.mxu0 %v2241_v2 }
 0x468   :  { %2072 = vmatpush3.bf16.msra.mxu0 %v2344_v17 }
 0x469   :  { %2073 = vmatprep.subr.bf16.mxu0 %v2241_v2 }
 0x46c   :  { %2075 = vmatpush3.bf16.msra.mxu0 %v2356_v20 }
 0x46d   :  { %2076 = vmatprep.subr.bf16.mxu0 %v2241_v2 }
 0x470   :  { %2078 = vmatpush3.bf16.msra.mxu0 %v2366_v23 }
 0x471   :  { %2079 = vmatprep.subr.bf16.mxu0 %v2241_v2 }
 0x474   :  { %2081 = vmatpush3.bf16.msra.mxu0 %v2376_v26 }
 0x475   :  { %2082 = vmatprep.subr.bf16.mxu0 %v2241_v2 }
 0x478   :  { %2084 = vmatpush3.bf16.msra.mxu0 %v2386_v29 }
 0x479   :  { %2085 = vmatprep.subr.bf16.mxu0 %v2241_v2 }
 0x47c   :  { %2087 = vmatpush3.bf16.msra.mxu0 %v2396_v32 }
 0x47d   :  { %2088 = vmatprep.subr.bf16.mxu0 %v2241_v2 }
 0x480   :  { %2090 = vmatpush3.bf16.msra.mxu0 %v2406_v35 }
 0x481   :  { %2121 = vmatprep.subr.bf16.mxu0 %v2241_v2 }
 0x483   :  { %1790 = vmatmul.mubr.msk.f32.vlgmr.msra.gmra.mrb[4].mxu0 %vm73_vm10, %v2245_v39 }
 0x484   :  { %2123 = vmatpush3.bf16.msra.mxu0 %v2312_v9  ;;  %1846 = vmatprep.mubr.msk.f32.mxu0 %vm2242_vm0, %v2243_v7 }
 0x485   :  { %2124 = vmatprep.subr.bf16.mxu0 %v2241_v2 }
 0x488   :  { %2126 = vmatpush3.bf16.msra.mxu0 %v2318_v10 }
 0x489   :  { %2127 = vmatprep.subr.bf16.mxu0 %v2241_v2 }
 0x556   :  { %v822_v5 = vpop.f32.mrb[4].mxu0 }
 0x557   :  { %2232 = vtanh.f32 %v822_v5  ;;  %v1791_v6 = vpop.f32.mrb[5].mxu0 }
 0x561   :  { %v2233_v8 = vpop.eup %2232 }
 0x562   :  { %v828_v11 = vsel %vm827_vm11, %v2233_v8, %v682_v63 }
 0x563   :  { %1801 = vmatmul.mubr.msk.f32.vlgmr.msra.gmra.mrb[4].mxu1 %vm98_vm2, %v828_v11 }
 0x564   :  { %2099 = vmatpush3.bf16.msra.mxu1 %v2331_v14  ;;  %1835 = vmatprep.mubr.msk.f32.mxu1 %vm2242_vm0, %v2243_v7 }
 0x565   :  { %2100 = vmatprep.subr.bf16.mxu1 %v2241_v2 }
 0x568   :  { %2102 = vmatpush3.bf16.msra.mxu1 %v2344_v17 }
 0x569   :  { %2103 = vmatprep.subr.bf16.mxu1 %v2241_v2 }
 0x56c   :  { %2105 = vmatpush3.bf16.msra.mxu1 %v2356_v20 }
 0x56d   :  { %2106 = vmatprep.subr.bf16.mxu1 %v2241_v2 }
 0x570   :  { %2108 = vmatpush3.bf16.msra.mxu1 %v2366_v23 }
 0x571   :  { %2109 = vmatprep.subr.bf16.mxu1 %v2241_v2 }
 0x574   :  { %2111 = vmatpush3.bf16.msra.mxu1 %v2376_v26 }
 0x575   :  { %2112 = vmatprep.subr.bf16.mxu1 %v2241_v2 }
 0x578   :  { %2114 = vmatpush3.bf16.msra.mxu1 %v2386_v29 }
 0x579   :  { %2115 = vmatprep.subr.bf16.mxu1 %v2241_v2 }
 0x57c   :  { %2117 = vmatpush3.bf16.msra.mxu1 %v2396_v32 }
 0x57d   :  { %2118 = vmatprep.subr.bf16.mxu1 %v2241_v2 }
 0x580   :  { %2120 = vmatpush3.bf16.msra.mxu1 %v2406_v35 }
 0x581   :  { %2151 = vmatprep.subr.bf16.mxu1 %v2241_v2 }
 0x583   :  { %1836 = vmatmul.mubr.msk.f32.vlgmr.msra.gmra.mrb[4].mxu1 %vm79_vm12, %v2245_v39 }
 0x584   :  { %2153 = vmatpush3.bf16.msra.mxu1 %v2312_v9  ;;  %1892 = vmatprep.mubr.msk.f32.mxu1 %vm2242_vm0, %v2243_v7 }
 0x585   :  { %2154 = vmatprep.subr.bf16.mxu1 %v2241_v2 }
 0x588   :  { %2156 = vmatpush3.bf16.msra.mxu1 %v2318_v10 }
 0x589   :  { %2157 = vmatprep.subr.bf16.mxu1 %v2241_v2 }
 0x656   :  { %v968_v13 = vpop.f32.mrb[4].mxu1 }
 0x657   :  { %2234 = vtanh.f32 %v968_v13  ;;  %v1837_v15 = vpop.f32.mrb[5].mxu1 }
 0x661   :  { %v2235_v16 = vpop.eup %2234 }
 0x662   :  { %v974_v9 = vsel %vm973_vm13, %v2235_v16, %v828_v11 }
 0x663   :  { %1847 = vmatmul.mubr.msk.f32.vlgmr.msra.gmra.mrb[6].mxu0 %vm98_vm2, %v974_v9 }
 0x664   :  { %2129 = vmatpush3.bf16.msra.mxu0 %v2331_v14  ;;  %1881 = vmatprep.mubr.msk.f32.mxu0 %vm2242_vm0, %v2243_v7 }
 0x665   :  { %2130 = vmatprep.subr.bf16.mxu0 %v2241_v2 }
 0x668   :  { %2132 = vmatpush3.bf16.msra.mxu0 %v2344_v17 }
 0x669   :  { %2133 = vmatprep.subr.bf16.mxu0 %v2241_v2 }
 0x66c   :  { %2135 = vmatpush3.bf16.msra.mxu0 %v2356_v20 }
 0x66d   :  { %2136 = vmatprep.subr.bf16.mxu0 %v2241_v2 }
 0x670   :  { %2138 = vmatpush3.bf16.msra.mxu0 %v2366_v23 }
 0x671   :  { %2139 = vmatprep.subr.bf16.mxu0 %v2241_v2 }
 0x674   :  { %2141 = vmatpush3.bf16.msra.mxu0 %v2376_v26 }
 0x675   :  { %2142 = vmatprep.subr.bf16.mxu0 %v2241_v2 }
 0x678   :  { %2144 = vmatpush3.bf16.msra.mxu0 %v2386_v29 }
 0x679   :  { %2145 = vmatprep.subr.bf16.mxu0 %v2241_v2 }
 0x67c   :  { %2147 = vmatpush3.bf16.msra.mxu0 %v2396_v32 }
 0x67d   :  { %2148 = vmatprep.subr.bf16.mxu0 %v2241_v2 }
 0x680   :  { %2150 = vmatpush3.bf16.msra.mxu0 %v2406_v35 }
 0x681   :  { %2181 = vmatprep.subr.bf16.mxu0 %v2241_v2 }
 0x683   :  { %1882 = vmatmul.mubr.msk.f32.vlgmr.msra.gmra.mrb[6].mxu0 %vm85_vm14, %v2245_v39 }
 0x684   :  { %1938 = vmatprep.mubr.msk.f32.mxu0 %vm2242_vm0, %v2243_v7 }
 0x756   :  { %v1114_v10 = vpop.f32.mrb[6].mxu0 }
 0x757   :  { %2236 = vtanh.f32 %v1114_v10  ;;  %v1883_v18 = vpop.f32.mrb[7].mxu0 }
 0x761   :  { %v2237_v19 = vpop.eup %2236 }
 0x762   :  { %v1120_v21 = vsel %vm1119_vm15, %v2237_v19, %v974_v9 }
 0x763   :  { %1893 = vmatmul.mubr.msk.f32.vlgmr.msra.gmra.mrb[6].mxu1 %vm98_vm2, %v1120_v21 }
 0x764   :  { %2159 = vmatpush3.bf16.msra.mxu1 %v2331_v14  ;;  %1927 = vmatprep.mubr.msk.f32.mxu1 %vm2242_vm0, %v2243_v7  ;;  %v90_v7 = vpop.permute.xlu1 %89  ;;  %v1267_v14 = vld [vmem:[%s2640_s4] sm:$0xff] }
 0x765   :  { %2160 = vmatprep.subr.bf16.mxu1 %v2241_v2  ;;  %vm91_vm0 = vcmp.eq.s32.totalorder %v90_v7, %v2411_v37 }
 0x768   :  { %2162 = vmatpush3.bf16.msra.mxu1 %v2344_v17  ;;  %v1268_v17 = vld [vmem:[%s2640_s4 + $0x8] sm:$0xff] }
 0x769   :  { %2163 = vmatprep.subr.bf16.mxu1 %v2241_v2  ;;  %v2182_v22 = vpack.c.bf16 %v1268_v17, %v1267_v14 }
 0x76b   :  { %2183 = vmatpush3.bf16.msra.mxu0 %v2182_v22 }
 0x76c   :  { %2165 = vmatpush3.bf16.msra.mxu1 %v2356_v20  ;;  %v1269_v20 = vld [vmem:[%s2640_s4 + $0x10] sm:$0xff]  ;;  %2184 = vmatprep.subr.bf16.mxu0 %v2241_v2 }
 0x76d   :  { %2166 = vmatprep.subr.bf16.mxu1 %v2241_v2 }
 0x770   :  { %2168 = vmatpush3.bf16.msra.mxu1 %v2366_v23  ;;  %v1270_v23 = vld [vmem:[%s2640_s4 + $0x18] sm:$0xff] }
 0x771   :  { %2169 = vmatprep.subr.bf16.mxu1 %v2241_v2  ;;  %v2185_v24 = vpack.c.bf16 %v1270_v23, %v1269_v20 }
 0x773   :  { %2186 = vmatpush3.bf16.msra.mxu0 %v2185_v24 }
 0x774   :  { %2171 = vmatpush3.bf16.msra.mxu1 %v2376_v26 }
 0x775   :  { %2172 = vmatprep.subr.bf16.mxu1 %v2241_v2 }
 0x778   :  { %2174 = vmatpush3.bf16.msra.mxu1 %v2386_v29  ;;  %v1379_v29 = vld [vmem:[%s2641_s5] ss:$0 sm:$0xff] }
 0x779   :  { %2175 = vmatprep.subr.bf16.mxu1 %v2241_v2 }
 0x77c   :  { %2177 = vmatpush3.bf16.msra.mxu1 %v2396_v32 }
 0x77d   :  { %2178 = vmatprep.subr.bf16.mxu1 %v2241_v2 }
 0x780   :  { %2180 = vmatpush3.bf16.msra.mxu1 %v2406_v35 }
 0x783   :  { %1928 = vmatmul.mubr.msk.f32.vlgmr.msra.gmra.mrb[6].mxu1 %vm91_vm0, %v2245_v39 }
 0x856   :  { %v1260_v25 = vpop.f32.mrb[6].mxu1 }
 0x857   :  { %2238 = vtanh.f32 %v1260_v25  ;;  %v1929_v26 = vpop.f32.mrb[7].mxu1 }
 0x861   :  { %v2239_v27 = vpop.eup %2238 }
 0x862   :  { %v1266_v28 = vsel %vm1265_vm1, %v2239_v27, %v1120_v21 }
 0x863   :  { %1939 = vmatmul.mubr.msk.f32.vlgmr.msra.gmra.mrb[8].mxu0 %vm98_vm2, %v1266_v28 }
 0x936   :  { %v1347_v30 = vpop.f32.mrb[8].mxu0 }
 0x937   :  { %v1348_v31 = vadd.f32 %v1379_v29, %v1347_v30  ;;  %v1940_v32 = vpop.f32.mrb[9].mxu0 }
 0x939   :  { %1351 = vst [vmem:[%s2642_s6] sm:$0xff] %v1348_v31 }

</bundles_post_ra>
